<compile_context>
chip_gen: v7x
topology: tpu7x:2x2x1
jax: 0.10.0
libtpu: 0.0.40
codegen_flags: <defaults>
</compile_context>

<pallas_src>
import functools

import jax
import jax.numpy as jnp
from jax.experimental import pallas as pl
from jax.experimental.pallas import tpu as pltpu

EPS = 1e-5  # nn.BatchNorm2d default eps
_VMEM_LIMIT = 32 * 1024 * 1024


def _round_up(x, m):
    return (x + m - 1) // m * m


# --------------------------------------------------------------------------
# Pass 1: conv (im2col matmul) + per-channel sum / sum-of-squares accumulation
# --------------------------------------------------------------------------
def conv_stats_kernel(patches_ref, w1_ref, conv_ref, stats_ref):
    i = pl.program_id(0)

    # bf16 x bf16 -> f32 on the native MXU path.
    conv = jnp.dot(patches_ref[...], w1_ref[...],
                   preferred_element_type=jnp.float32)        # (TM, C_pad) f32
    conv_ref[...] = conv

    @pl.when(i == 0)
    def _init():
        stats_ref[...] = jnp.zeros_like(stats_ref)

    sums = jnp.sum(conv, axis=0, keepdims=True)               # (1, C_pad)
    sqs = jnp.sum(conv * conv, axis=0, keepdims=True)         # (1, C_pad)
    stats_ref[...] += jnp.concatenate([sums, sqs], axis=0)    # (2, C_pad)


# --------------------------------------------------------------------------
# Pass 2: BN affine + ReLU + residual (1x1-downsample matmul or identity)
# --------------------------------------------------------------------------
def apply_kernel(conv_ref, x_ref, r_ref, affine_ref, out_ref):
    conv = conv_ref[...]                                      # (TM, C_pad) f32
    scale = affine_ref[0:1, :]                                # (1, C_pad)
    shift = affine_ref[1:2, :]                                # (1, C_pad)
    act = jnp.maximum(conv * scale + shift, 0.0)              # BN + ReLU in f32

    res = jnp.dot(x_ref[...], r_ref[...],
                  preferred_element_type=jnp.float32)         # (TM, C_pad) f32
    out_ref[...] = (act + res).astype(out_ref.dtype)


# --------------------------------------------------------------------------
# Wrapper
# --------------------------------------------------------------------------
def _im2col_3x3(x_nhwc, stride=1):
    """3x3 patches, padding=1 (matches PyTorch conv padding=1). Keeps x's dtype."""
    n, h, w, c = x_nhwc.shape
    xp = jnp.pad(x_nhwc, ((0, 0), (1, 1), (1, 1), (0, 0)))
    h_out = (h + 2 - 3) // stride + 1
    w_out = (w + 2 - 3) // stride + 1
    cols = []
    for kh in range(3):
        for kw in range(3):
            cols.append(xp[:, kh:kh + (h_out - 1) * stride + 1:stride,
                              kw:kw + (w_out - 1) * stride + 1:stride, :])
    patches = jnp.concatenate(cols, axis=-1)      # (N, Ho, Wo, 9*C), (kh, kw, c) order
    return patches.reshape(n * h_out * w_out, 9 * c), (h_out, w_out)


@functools.partial(jax.jit, static_argnames=("stride", "block_rows"))
def resblock_forward(x_nchw, w_conv1, gamma, beta, w_down=None, *,
                     stride=1, block_rows=1024):
    """Forward pass of ResBlock. x is NCHW (PyTorch convention), output f32 NCHW."""
    if stride != 1:
        # The PyTorch module's residual add (identity or stride-1 1x1 conv) only
        # type-checks for stride == 1; other strides are undefined in the spec.
        raise NotImplementedError("ResBlock residual add requires stride == 1")

    n, c_in, h, w = x_nchw.shape
    c_out = w_conv1.shape[0]
    c_pad = _round_up(max(c_out, 1), 128)

    x_nhwc = jnp.transpose(x_nchw, (0, 2, 3, 1)).astype(jnp.float32)
    x_bf16 = x_nhwc.astype(jnp.bfloat16)

    patches, (h_out, w_out) = _im2col_3x3(x_bf16, stride)     # (M, 9*c_in) bf16
    m = n * h_out * w_out
    k = 9 * c_in

    tm = _round_up(min(block_rows, _round_up(m, 8)), 8)
    m_pad = _round_up(m, tm)
    nt = m_pad // tm

    # Zero row-padding: zero patches give zero conv rows -> no stats contamination
    # (mean/var are divided by the true M below).
    patches = jnp.pad(patches, ((0, m_pad - m), (0, 0)))
    x_flat = jnp.pad(x_bf16.reshape(n * h * w, c_in), ((0, m_pad - m), (0, 0)))

    # conv1 weights: (O, I, 3, 3) -> (kh, kw, I, O) -> (9*I, O), channel-padded, bf16.
    w1_mat = jnp.transpose(w_conv1, (2, 3, 1, 0)).reshape(k, c_out)
    w1_mat = jnp.pad(w1_mat.astype(jnp.float32), ((0, 0), (0, c_pad - c_out)))
    w1_mat = w1_mat.astype(jnp.bfloat16)

    # Residual projection R: 1x1 downsample weights, or identity when in_c == out_c.
    if c_in != c_out:
        r_mat = jnp.transpose(w_down[:, :, 0, 0], (1, 0)).astype(jnp.float32)
    else:
        r_mat = jnp.eye(c_in, dtype=jnp.float32)
    r_mat = jnp.pad(r_mat, ((0, 0), (0, c_pad - c_out))).astype(jnp.bfloat16)

    gamma_p = jnp.pad(gamma.astype(jnp.float32), (0, c_pad - c_out))
    beta_p = jnp.pad(beta.astype(jnp.float32), (0, c_pad - c_out))

    # -------------------- pass 1: conv + batch statistics --------------------
    conv_f32, stats = pl.pallas_call(
        conv_stats_kernel,
        grid=(nt,),
        in_specs=[
            pl.BlockSpec((tm, k), lambda i: (i, 0)),
            pl.BlockSpec((k, c_pad), lambda i: (0, 0)),
        ],
        out_specs=[
            pl.BlockSpec((tm, c_pad), lambda i: (i, 0)),
            pl.BlockSpec((2, c_pad), lambda i: (0, 0)),   # resident accumulator
        ],
        out_shape=[
            jax.ShapeDtypeStruct((m_pad, c_pad), jnp.float32),
            jax.ShapeDtypeStruct((2, c_pad), jnp.float32),
        ],
        compiler_params=pltpu.CompilerParams(
            dimension_semantics=("arbitrary",),
            vmem_limit_bytes=_VMEM_LIMIT),
    )(patches, w1_mat)

    # -------- finalize BN affine (tiny, hoisted out of the tile loop) --------
    inv_m = 1.0 / float(m)
    mean = stats[0] * inv_m
    var = jnp.maximum(stats[1] * inv_m - mean * mean, 0.0)   # biased var (training BN)
    scale = gamma_p * jax.lax.rsqrt(var + EPS)
    shift = beta_p - mean * scale
    affine = jnp.stack([scale, shift], axis=0)               # (2, c_pad) f32

    # ---------------- pass 2: normalize + ReLU + residual add ----------------
    out_flat = pl.pallas_call(
        apply_kernel,
        grid=(nt,),
        in_specs=[
            pl.BlockSpec((tm, c_pad), lambda i: (i, 0)),
            pl.BlockSpec((tm, c_in), lambda i: (i, 0)),
            pl.BlockSpec((c_in, c_pad), lambda i: (0, 0)),
            pl.BlockSpec((2, c_pad), lambda i: (0, 0)),
        ],
        out_specs=pl.BlockSpec((tm, c_pad), lambda i: (i, 0)),
        out_shape=jax.ShapeDtypeStruct((m_pad, c_pad), jnp.float32),
        compiler_params=pltpu.CompilerParams(
            dimension_semantics=("parallel",),
            vmem_limit_bytes=_VMEM_LIMIT),
    )(conv_f32, x_flat, r_mat, affine)

    out = out_flat[:m, :c_out].reshape(n, h_out, w_out, c_out)
    return jnp.transpose(out, (0, 3, 1, 2))                   # back to NCHW


# --------------------------------------------------------------------------
# Plain-JAX reference (matches PyTorch ResBlock.forward, training-mode BN)
# --------------------------------------------------------------------------
def reference_resblock(x, w1, gamma, beta, wd=None):
    conv = jax.lax.conv_general_dilated(
        x, w1, window_strides=(1, 1), padding=((1, 1), (1, 1)),
        dimension_numbers=('NCHW', 'OIHW', 'NCHW'),
        precision=jax.lax.Precision.HIGHEST)
    mean = jnp.mean(conv, axis=(0, 2, 3), keepdims=True)
    var = jnp.mean((conv - mean) ** 2, axis=(0, 2, 3), keepdims=True)
    bn = (conv - mean) * jax.lax.rsqrt(var + EPS) * gamma.reshape(1, -1, 1, 1) \
         + beta.reshape(1, -1, 1, 1)
    act = jnp.maximum(bn, 0.0)
    in_c, out_c = x.shape[1], w1.shape[0]
    if in_c != out_c:
        res = jax.lax.conv_general_dilated(
            x, wd, window_strides=(1, 1), padding='VALID',
            dimension_numbers=('NCHW', 'OIHW', 'NCHW'),
            precision=jax.lax.Precision.HIGHEST)
    else:
        res = x
    return act + res


if __name__ == "__main__":
    key = jax.random.PRNGKey(0)
    k_x, k_w1, k_wd, k_x2, k_w12 = jax.random.split(key, 5)

    # ---------------- case 1: in_c != out_c (1x1 downsample residual) ----------------
    N, IN_C, OUT_C, H, W = 2, 4, 8, 16, 16
    x = jax.random.normal(k_x, (N, IN_C, H, W), dtype=jnp.float32)
    w_conv1 = jax.random.normal(k_w1, (OUT_C, IN_C, 3, 3), dtype=jnp.float32) * 0.1
    gamma = jnp.ones((OUT_C,), dtype=jnp.float32)     # nn.BatchNorm2d default init
    beta = jnp.zeros((OUT_C,), dtype=jnp.float32)
    w_down = jax.random.normal(k_wd, (OUT_C, IN_C, 1, 1), dtype=jnp.float32) * 0.1

    # block_rows=128 -> 4 row tiles: exercises the pipelined grid + stats accumulation.
    out1 = jax.block_until_ready(
        resblock_forward(x, w_conv1, gamma, beta, w_down, block_rows=128))
    ref1 = jax.block_until_ready(reference_resblock(x, w_conv1, gamma, beta, w_down))
    assert out1.shape == (N, OUT_C, H, W), out1.shape
    # bf16 MXU operands (vs f32 HIGHEST reference) -> slightly loosened tolerance.
    assert jnp.allclose(out1, ref1, atol=2e-2, rtol=2e-2), \
        float(jnp.max(jnp.abs(out1 - ref1)))

    # ---------------- case 2: in_c == out_c (identity residual) ----------------
    x2 = jax.random.normal(k_x2, (N, OUT_C, H, W), dtype=jnp.float32)
    w_conv2 = jax.random.normal(k_w12, (OUT_C, OUT_C, 3, 3), dtype=jnp.float32) * 0.1

    out2 = jax.block_until_ready(
        resblock_forward(x2, w_conv2, gamma, beta, None, block_rows=128))
    ref2 = jax.block_until_ready(reference_resblock(x2, w_conv2, gamma, beta, None))
    assert out2.shape == (N, OUT_C, H, W), out2.shape
    assert jnp.allclose(out2, ref2, atol=2e-2, rtol=2e-2), \
        float(jnp.max(jnp.abs(out2 - ref2)))

    print("KERNEL_OK")
</pallas_src>

<mosaic_0001>
module attributes {stable_mosaic.version = 11 : i64} {
  func.func @conv_stats_kernel(%arg0: i32, %arg1: memref<128x36xbf16, #tpu.memory_space<vmem>>, %arg2: memref<36x128xbf16, #tpu.memory_space<vmem>>, %arg3: memref<128x128xf32, #tpu.memory_space<vmem>>, %arg4: memref<2x128xf32, #tpu.memory_space<vmem>>) attributes {dimension_semantics = [#tpu.dimension_semantics<arbitrary>], iteration_bounds = array<i64: 4>, scalar_prefetch = 0 : i64, scratch_operands = 0 : i64, tpu.core_type = #tpu.core_type<tc>, window_params = [{transform_indices = @transform_0, window_bounds = array<i64: 128, 36>}, {pipeline_mode = #tpu.pipeline_mode<synchronous>, transform_indices = @transform_1, window_bounds = array<i64: 36, 128>}, {transform_indices = @transform_2, window_bounds = array<i64: 128, 128>}, {pipeline_mode = #tpu.pipeline_mode<synchronous>, transform_indices = @transform_3, window_bounds = array<i64: 2, 128>}]} {
    %c0 = arith.constant 0 : index
    %c0_0 = arith.constant 0 : index
    %0 = vector.load %arg1[%c0, %c0_0] : memref<128x36xbf16, #tpu.memory_space<vmem>>, vector<128x36xbf16>
    %c0_1 = arith.constant 0 : index
    %c0_2 = arith.constant 0 : index
    %1 = vector.load %arg2[%c0_1, %c0_2] : memref<36x128xbf16, #tpu.memory_space<vmem>>, vector<36x128xbf16>
    %cst = arith.constant dense<0.000000e+00> : vector<128x128xf32>
    %2 = tpu.matmul %0, %1, %cst {dimension_numbers = #tpu.dot_dimension_numbers<[1], [0], [0], [1], [0, 0, 1, 1], [], []>} : vector<128x36xbf16>, vector<36x128xbf16>, vector<128x128xf32> -> vector<128x128xf32>
    %c0_3 = arith.constant 0 : index
    %c0_4 = arith.constant 0 : index
    %3 = vector.load %arg3[%c0_3, %c0_4] : memref<128x128xf32, #tpu.memory_space<vmem>>, vector<128x128xf32>
    tpu.vector_store %arg3[%c0_3, %c0_4], %2 {strides = array<i32>} : memref<128x128xf32, #tpu.memory_space<vmem>>, vector<128x128xf32>,
    %c0_i32 = arith.constant 0 : i32
    %4 = arith.cmpi eq, %arg0, %c0_i32 : i32
    %5 = arith.extui %4 : i1 to i32
    %c0_i32_5 = arith.constant 0 : i32
    %6 = arith.cmpi ne, %5, %c0_i32_5 : i32
    scf.if %6 {
      %cst_12 = arith.constant 0.000000e+00 : f32
      %16 = vector.broadcast %cst_12 : f32 to vector<2x128xf32>
      %c0_13 = arith.constant 0 : index
      %c0_14 = arith.constant 0 : index
      %17 = vector.load %arg4[%c0_13, %c0_14] : memref<2x128xf32, #tpu.memory_space<vmem>>, vector<2x128xf32>
      tpu.vector_store %arg4[%c0_13, %c0_14], %16 {strides = array<i32>} : memref<2x128xf32, #tpu.memory_space<vmem>>, vector<2x128xf32>,
    } else {
    }
    %cst_6 = arith.constant dense<0.000000e+00> : vector<128xf32>
    %7 = vector.multi_reduction <add>, %2, %cst_6 [0] : vector<128x128xf32> to vector<128xf32>
    %8 = vector.shape_cast %7 : vector<128xf32> to vector<1x128xf32>
    %9 = arith.mulf %2, %2 : vector<128x128xf32>
    %cst_7 = arith.constant dense<0.000000e+00> : vector<128xf32>
    %10 = vector.multi_reduction <add>, %9, %cst_7 [0] : vector<128x128xf32> to vector<128xf32>
    %11 = vector.shape_cast %10 : vector<128xf32> to vector<1x128xf32>
    %c0_8 = arith.constant 0 : index
    %c0_9 = arith.constant 0 : index
    %12 = vector.load %arg4[%c0_8, %c0_9] : memref<2x128xf32, #tpu.memory_space<vmem>>, vector<2x128xf32>
    %13 = tpu.concatenate %8, %11 in 0 : vector<1x128xf32>, vector<1x128xf32> -> vector<2x128xf32>
    %14 = arith.addf %12, %13 : vector<2x128xf32>
    %c0_10 = arith.constant 0 : index
    %c0_11 = arith.constant 0 : index
    %15 = vector.load %arg4[%c0_10, %c0_11] : memref<2x128xf32, #tpu.memory_space<vmem>>, vector<2x128xf32>
    tpu.vector_store %arg4[%c0_10, %c0_11], %14 {strides = array<i32>} : memref<2x128xf32, #tpu.memory_space<vmem>>, vector<2x128xf32>,
    return
  }
  func.func @transform_0(%arg0: i32) -> (i32, i32) {
    %c0_i32 = arith.constant 0 : i32
    %c0_i32_0 = arith.constant 0 : i32
    return %arg0, %c0_i32 : i32, i32
  }
  func.func @transform_1(%arg0: i32) -> (i32, i32) {
    %c0_i32 = arith.constant 0 : i32
    %c0_i32_0 = arith.constant 0 : i32
    %c0_i32_1 = arith.constant 0 : i32
    return %c0_i32, %c0_i32_0 : i32, i32
  }
  func.func @transform_2(%arg0: i32) -> (i32, i32) {
    %c0_i32 = arith.constant 0 : i32
    %c0_i32_0 = arith.constant 0 : i32
    return %arg0, %c0_i32 : i32, i32
  }
  func.func @transform_3(%arg0: i32) -> (i32, i32) {
    %c0_i32 = arith.constant 0 : i32
    %c0_i32_0 = arith.constant 0 : i32
    %c0_i32_1 = arith.constant 0 : i32
    return %c0_i32, %c0_i32_0 : i32, i32
  }
}

module attributes {stable_mosaic.version = 11 : i64} {
  func.func @apply_kernel(%arg0: i32, %arg1: memref<128x128xf32, #tpu.memory_space<vmem>>, %arg2: memref<128x4xbf16, #tpu.memory_space<vmem>>, %arg3: memref<4x128xbf16, #tpu.memory_space<vmem>>, %arg4: memref<2x128xf32, #tpu.memory_space<vmem>>, %arg5: memref<128x128xf32, #tpu.memory_space<vmem>>) attributes {dimension_semantics = [#tpu.dimension_semantics<parallel>], iteration_bounds = array<i64: 4>, scalar_prefetch = 0 : i64, scratch_operands = 0 : i64, tpu.core_type = #tpu.core_type<tc>, window_params = [{transform_indices = @transform_0, window_bounds = array<i64: 128, 128>}, {transform_indices = @transform_1, window_bounds = array<i64: 128, 4>}, {pipeline_mode = #tpu.pipeline_mode<synchronous>, transform_indices = @transform_2, window_bounds = array<i64: 4, 128>}, {pipeline_mode = #tpu.pipeline_mode<synchronous>, transform_indices = @transform_3, window_bounds = array<i64: 2, 128>}, {transform_indices = @transform_4, window_bounds = array<i64: 128, 128>}]} {
    %c0 = arith.constant 0 : index
    %c0_0 = arith.constant 0 : index
    %0 = vector.load %arg1[%c0, %c0_0] : memref<128x128xf32, #tpu.memory_space<vmem>>, vector<128x128xf32>
    %c0_1 = arith.constant 0 : index
    %c0_2 = arith.constant 0 : index
    %1 = vector.load %arg4[%c0_1, %c0_2] : memref<2x128xf32, #tpu.memory_space<vmem>>, vector<1x128xf32>
    %c1 = arith.constant 1 : index
    %c0_3 = arith.constant 0 : index
    %2 = vector.load %arg4[%c1, %c0_3] : memref<2x128xf32, #tpu.memory_space<vmem>>, vector<1x128xf32>
    %3 = vector.broadcast %1 : vector<1x128xf32> to vector<128x128xf32>
    %4 = arith.mulf %0, %3 : vector<128x128xf32>
    %5 = vector.broadcast %2 : vector<1x128xf32> to vector<128x128xf32>
    %6 = arith.addf %4, %5 : vector<128x128xf32>
    %cst = arith.constant 0.000000e+00 : f32
    %7 = vector.broadcast %cst : f32 to vector<128x128xf32>
    %8 = arith.maximumf %6, %7 : vector<128x128xf32>
    %c0_4 = arith.constant 0 : index
    %c0_5 = arith.constant 0 : index
    %9 = vector.load %arg2[%c0_4, %c0_5] : memref<128x4xbf16, #tpu.memory_space<vmem>>, vector<128x4xbf16>
    %c0_6 = arith.constant 0 : index
    %c0_7 = arith.constant 0 : index
    %10 = vector.load %arg3[%c0_6, %c0_7] : memref<4x128xbf16, #tpu.memory_space<vmem>>, vector<4x128xbf16>
    %cst_8 = arith.constant dense<0.000000e+00> : vector<128x128xf32>
    %11 = tpu.matmul %9, %10, %cst_8 {dimension_numbers = #tpu.dot_dimension_numbers<[1], [0], [0], [1], [0, 0, 1, 1], [], []>} : vector<128x4xbf16>, vector<4x128xbf16>, vector<128x128xf32> -> vector<128x128xf32>
    %12 = arith.addf %8, %11 : vector<128x128xf32>
    %c0_9 = arith.constant 0 : index
    %c0_10 = arith.constant 0 : index
    %13 = vector.load %arg5[%c0_9, %c0_10] : memref<128x128xf32, #tpu.memory_space<vmem>>, vector<128x128xf32>
    tpu.vector_store %arg5[%c0_9, %c0_10], %12 {strides = array<i32>} : memref<128x128xf32, #tpu.memory_space<vmem>>, vector<128x128xf32>,
    return
  }
  func.func @transform_0(%arg0: i32) -> (i32, i32) {
    %c0_i32 = arith.constant 0 : i32
    %c0_i32_0 = arith.constant 0 : i32
    return %arg0, %c0_i32 : i32, i32
  }
  func.func @transform_1(%arg0: i32) -> (i32, i32) {
    %c0_i32 = arith.constant 0 : i32
    %c0_i32_0 = arith.constant 0 : i32
    return %arg0, %c0_i32 : i32, i32
  }
  func.func @transform_2(%arg0: i32) -> (i32, i32) {
    %c0_i32 = arith.constant 0 : i32
    %c0_i32_0 = arith.constant 0 : i32
    %c0_i32_1 = arith.constant 0 : i32
    return %c0_i32, %c0_i32_0 : i32, i32
  }
  func.func @transform_3(%arg0: i32) -> (i32, i32) {
    %c0_i32 = arith.constant 0 : i32
    %c0_i32_0 = arith.constant 0 : i32
    %c0_i32_1 = arith.constant 0 : i32
    return %c0_i32, %c0_i32_0 : i32, i32
  }
  func.func @transform_4(%arg0: i32) -> (i32, i32) {
    %c0_i32 = arith.constant 0 : i32
    %c0_i32_0 = arith.constant 0 : i32
    return %arg0, %c0_i32 : i32, i32
  }
}

</mosaic_0001>

<bundles_post_ra>
// kernel: resblock_forward.2
= control target key start
LH: loop header
LB: loop body
LE: loop exit
PB: predicated region body
PF: predicated region fallthrough
CT: control target
= control target key end

     0   :  { %s642_s12 = smov 0   ;;  %s711_s0 = inlined_call_operand.vmem [shape: bf16[512,36], index: 0, kind: input, shape index: {}]   ;;  %s712_s1 = inlined_call_operand.vmem [shape: bf16[36,128], index: 1, kind: input, shape index: {}]   ;;  %s713_s2 = inlined_call_operand.vmem [shape: f32[512,128], index: 2, kind: output, shape index: {0}]   ;;  %s714_s3 = inlined_call_operand.vmem [shape: f32[2,128], index: 3, kind: output, shape index: {1}]  }
   0x1 LB: > { %s521_s13 = sadd.s32 4294967295, %s619_s12   ;;  %p525_p0 = scmp.ge.s32.totalorder %s619_s12, 1  ;;  %s619_s12 = sphi %s642_s12, %s14_s12  }
   0x2   : > { %p136_p1 = scmp.lt.s32.totalorder %s619_s12, 5 }
   0x4   : > { %p137_p2 = pnand %p525_p0, %p136_p1 }
   0x5   : > { %v602_v0 = vld [vmem:[%s712_s1] sm:$0xff] (!%p137_p2)   ;;  %v603_v1 = vld [vmem:[%s712_s1 + $0x8] sm:$0xff] (!%p137_p2)   ;;  %s526_s18 = sshll.u32 (!%p137_p2), %s521_s13, 4  ;;  %v604_v2 = vld [vmem:[%s712_s1 + $0x10] ss:$0 sps:$4 sm:$0x33] (!%p137_p2)  }
   0x6   : > { %140 = sbr.rel (%p137_p2) target bundleno = 291 (0x123), region = 28  ;;  %563 = vmatprep.subr.bf16.mxu0 (!%p137_p2), %v602_v0  ;;  %585 = vmatprep.subr.bf16.mxu1 (!%p137_p2), %v602_v0  ;;  %p161_p3 = scmp.lt.s32.totalorder (!%p137_p2), %s526_s18, 63  ;;  %vm274_vm0 = vcmask (!%p137_p2), 1041408   ;;  %vm249_vm1 = vcmask (!%p137_p2), 293888  }
   0x7   : > { %564 = vmatpush3.bf16.msra.mxu0 (!%p137_p2), %v602_v0  ;;  %588 = vmatpush3.bf16.msra.mxu1 (!%p137_p2), %v602_v0  ;;  %v276_v3 = vsel (!%p137_p2), %vm274_vm0, %v604_v2, 0  ;;  %p549_p4 = scmp.ne.s32.totalorder (!%p137_p2), %s521_s13, 0 }
   0x8   : > { %565 = vmatprep.subr.bf16.mxu0 (!%p137_p2), %v603_v1  ;;  %586 = vmatprep.subr.bf16.mxu1 (!%p137_p2), %v603_v1 }
   0xb   : > { %566 = vmatpush3.bf16.msra.mxu0 (!%p137_p2), %v603_v1  ;;  %589 = vmatpush3.bf16.msra.mxu1 (!%p137_p2), %v603_v1 }
   0xc   : > { %591 = vmatprep.subr.msk.bf16.mxu0 (!%p137_p2), %vm274_vm0, %v604_v2  ;;  %592 = vmatprep.subr.msk.bf16.mxu1 (!%p137_p2), %vm274_vm0, %v604_v2 }
   0xd   : > { %s716_s18 = smov (!%p161_p3, %s526_s18), 63  ;;  %v621_v28 = vmov (!%p549_p4), 0.0  }
   0xe   : > { %s527_s21 = sshll.u32 %s716_s18, 2  ;;  %s529_s25 = sshll.u32 %s716_s18, 3  ;;  %395 = vst [vmem:[%s714_s3] sm:$0x3] (!%p549_p4), %v621_v28 }
   0xf   : > { %s164_s24 = scalar_lea.vmem %s711_s0, %s527_s21  ;;  %568 = vmatpush3.bf16.msra.mxu0 %v276_v3  ;;  %590 = vmatpush3.bf16.msra.mxu1 %v276_v3  ;;  %s679_s28 = scalar_lea.vmem %s713_s2, %s529_s25 }
  0x10   : > { %v605_v4 = vld [vmem:[%s164_s24] sm:$0xff]   ;;  %v607_v6 = vld [vmem:[%s164_s24 + $0x8] sm:$0xff]   ;;  %v609_v8 = vld [vmem:[%s164_s24 + $0x10] sm:$0xff]  }
  0x11   : > { %v606_v5 = vld [vmem:[%s164_s24 + $0x20] sm:$0xff]   ;;  %569 = vmatprep.mubr.msk.bf16.mxu0 %vm249_vm1, %v605_v4  ;;  %v608_v7 = vld [vmem:[%s164_s24 + $0x28] sm:$0xff]   ;;  %v610_v9 = vld [vmem:[%s164_s24 + $0x30] sm:$0xff]  }
  0x12   : > { %577 = vmatprep.mubr.msk.bf16.mxu1 %vm249_vm1, %v606_v5  ;;  %570 = vmatmul.mubr.msk.bf16.vlgmr.msra.gmra.mrb[0].mxu0 %vm249_vm1, %v607_v6  ;;  %v611_v10 = vld [vmem:[%s164_s24 + $0x18] sm:$0xff]  }
  0x13   : > { %578 = vmatmul.mubr.msk.bf16.vlgmr.msra.gmra.mrb[0].mxu1 %vm249_vm1, %v608_v7  ;;  %573 = vmatprep.mubr.msk.bf16.mxu0 %vm249_vm1, %v609_v8  ;;  %v612_v11 = vld [vmem:[%s164_s24 + $0x38] sm:$0xff]  }
  0x14   : > { %581 = vmatprep.mubr.msk.bf16.mxu1 %vm249_vm1, %v610_v9 }
  0x1a   : > { %574 = vmatmul.mubr.msk.bf16.gmra.mrb[4].mxu0 %vm249_vm1, %v611_v10 }
  0x1b   : > { %582 = vmatmul.mubr.msk.bf16.gmra.mrb[4].mxu1 %vm249_vm1, %v612_v11 }
  0xe5   : > { %v571_v12 = vpop.f32.mrb[0].mxu0 }
  0xe6   : > { %v579_v13 = vpop.f32.mrb[0].mxu1  ;;  %377 = vst [vmem:[%s679_s28 + $0x10] sm:$0xff] %v571_v12  ;;  %v312_v14 = vpop.f32.mrb[1].mxu0 }
  0xe7   : > { %385 = vst [vmem:[%s679_s28 + $0x50] sm:$0xff] %v579_v13  ;;  %v344_v15 = vpop.f32.mrb[1].mxu1  ;;  %375 = vst [vmem:[%s679_s28] sm:$0xff] %v312_v14  ;;  %v572_v16 = vpop.f32.mrb[2].mxu0 }
  0xe8   : > { %383 = vst [vmem:[%s679_s28 + $0x40] sm:$0xff] %v344_v15  ;;  %v580_v17 = vpop.f32.mrb[2].mxu1  ;;  %378 = vst [vmem:[%s679_s28 + $0x18] sm:$0xff] %v572_v16  ;;  %v315_v18 = vpop.f32.mrb[3].mxu0 }
  0xe9   : > { %386 = vst [vmem:[%s679_s28 + $0x58] sm:$0xff] %v580_v17  ;;  %v347_v19 = vpop.f32.mrb[3].mxu1  ;;  %376 = vst [vmem:[%s679_s28 + $0x8] sm:$0xff] %v315_v18 }
  0xea   : > { %384 = vst [vmem:[%s679_s28 + $0x48] sm:$0xff] %v347_v19 }
  0xec   : > { %394 = sbr.rel (%p549_p4) target bundleno = 243 (0xf3), region = 32 }
  0xed   : > { %v575_v20 = vpop.f32.mrb[4].mxu0 }
  0xee   : > { %v583_v21 = vpop.f32.mrb[4].mxu1  ;;  %381 = vst [vmem:[%s679_s28 + $0x30] sm:$0xff] %v575_v20  ;;  %v328_v22 = vpop.f32.mrb[5].mxu0 }
  0xef   : > { %389 = vst [vmem:[%s679_s28 + $0x70] sm:$0xff] %v583_v21  ;;  %v360_v23 = vpop.f32.mrb[5].mxu1  ;;  %379 = vst [vmem:[%s679_s28 + $0x20] sm:$0xff] %v328_v22  ;;  %v576_v24 = vpop.f32.mrb[6].mxu0 }
  0xf0   : > { %387 = vst [vmem:[%s679_s28 + $0x60] sm:$0xff] %v360_v23  ;;  %v584_v25 = vpop.f32.mrb[6].mxu1  ;;  %382 = vst [vmem:[%s679_s28 + $0x38] sm:$0xff] %v576_v24  ;;  %v331_v26 = vpop.f32.mrb[7].mxu0 }
  0xf1   : > { %390 = vst [vmem:[%s679_s28 + $0x78] sm:$0xff] %v584_v25  ;;  %v363_v27 = vpop.f32.mrb[7].mxu1  ;;  %380 = vst [vmem:[%s679_s28 + $0x28] sm:$0xff] %v331_v26 }
  0xf2   : > { %388 = vst [vmem:[%s679_s28 + $0x68] sm:$0xff] %v363_v27 }
  0xf3 PF: > { %v396_v29 = vadd.f32 %v315_v18, %v312_v14  ;;  %v417_v30 = vmul.f32 %v312_v14, %v312_v14  ;;  %v418_v31 = vmul.f32 %v315_v18, %v315_v18  ;;  %v419_v33 = vmul.f32 %v571_v12, %v571_v12 }
  0xf4   : > { %v420_v35 = vmul.f32 %v572_v16, %v572_v16  ;;  %v421_v38 = vmul.f32 %v328_v22, %v328_v22  ;;  %v422_v41 = vmul.f32 %v331_v26, %v331_v26  ;;  %v423_v44 = vmul.f32 %v575_v20, %v575_v20 }
  0xf5   : > { %v397_v32 = vadd.f32 %v571_v12, %v396_v29  ;;  %v433_v36 = vadd.f32 %v418_v31, %v417_v30  ;;  %v424_v47 = vmul.f32 %v576_v24, %v576_v24  ;;  %v425_v50 = vmul.f32 %v344_v15, %v344_v15 }
  0xf6   : > { %v426_v53 = vmul.f32 %v347_v19, %v347_v19  ;;  %v427_v56 = vmul.f32 %v579_v13, %v579_v13  ;;  %v428_v59 = vmul.f32 %v580_v17, %v580_v17  ;;  %v429_v62 = vmul.f32 %v360_v23, %v360_v23 }
  0xf7   : > { %v398_v34 = vadd.f32 %v572_v16, %v397_v32  ;;  %v434_v39 = vadd.f32 %v433_v36, %v419_v33  ;;  %v430_v1 = vmul.f32 %v363_v27, %v363_v27  ;;  %v431_v4 = vmul.f32 %v583_v21, %v583_v21 }
  0xf8   : > { %v432_v7 = vmul.f32 %v584_v25, %v584_v25  ;;  %vm455_vm2 = vcmask 1040384  }
  0xf9   : > { %v399_v37 = vadd.f32 %v398_v34, %v328_v22  ;;  %v435_v42 = vadd.f32 %v434_v39, %v420_v35 }
  0xfb   : > { %v400_v40 = vadd.f32 %v399_v37, %v331_v26  ;;  %v436_v45 = vadd.f32 %v435_v42, %v421_v38 }
  0xfd   : > { %v401_v43 = vadd.f32 %v575_v20, %v400_v40  ;;  %v437_v48 = vadd.f32 %v436_v45, %v422_v41 }
  0xff   : > { %v402_v46 = vadd.f32 %v576_v24, %v401_v43  ;;  %v438_v51 = vadd.f32 %v437_v48, %v423_v44 }
 0x101   : > { %v403_v49 = vadd.f32 %v402_v46, %v344_v15  ;;  %v439_v54 = vadd.f32 %v438_v51, %v424_v47 }
 0x103   : > { %v404_v52 = vadd.f32 %v403_v49, %v347_v19  ;;  %v440_v57 = vadd.f32 %v439_v54, %v425_v50 }
 0x105   : > { %v405_v55 = vadd.f32 %v579_v13, %v404_v52  ;;  %v441_v60 = vadd.f32 %v440_v57, %v426_v53 }
 0x107   : > { %v406_v58 = vadd.f32 %v580_v17, %v405_v55  ;;  %v442_v63 = vadd.f32 %v441_v60, %v427_v56 }
 0x109   : > { %v407_v61 = vadd.f32 %v406_v58, %v360_v23  ;;  %v443_v2 = vadd.f32 %v442_v63, %v428_v59 }
 0x10b   : > { %v408_v0 = vadd.f32 %v407_v61, %v363_v27  ;;  %v444_v5 = vadd.f32 %v443_v2, %v429_v62 }
 0x10d   : > { %v409_v3 = vadd.f32 %v583_v21, %v408_v0  ;;  %v445_v8 = vadd.f32 %v444_v5, %v430_v1  ;;  %v454_v21 = vld [vmem:[%s714_s3] sm:$0x3] }
 0x10f   : > { %v410_v6 = vadd.f32 %v584_v25, %v409_v3  ;;  %v446_v10 = vadd.f32 %v445_v8, %v431_v4 }
 0x111   : > { %v411_v9 = vrot.slane %v410_v6, 4  ;;  %v447_v12 = vadd.f32 %v446_v10, %v432_v7 }
 0x113   : > { %v412_v11 = vadd.f32 %v411_v9, %v410_v6  ;;  %v448_v14 = vrot.slane %v447_v12, 4 }
 0x115   : > { %v413_v13 = vrot.slane %v412_v11, 2  ;;  %v449_v16 = vadd.f32 %v448_v14, %v447_v12 }
 0x117   : > { %v414_v15 = vadd.f32 %v413_v13, %v412_v11  ;;  %v450_v18 = vrot.slane %v449_v16, 2 }
 0x119   : > { %v415_v17 = vrot.slane %v414_v15, 1  ;;  %v451_v19 = vadd.f32 %v450_v18, %v449_v16 }
 0x11b   : > { %v416_v20 = vadd.f32 %v415_v17, %v414_v15  ;;  %v452_v22 = vrot.slane %v451_v19, 1 }
 0x11d   : > { %v453_v23 = vadd.f32 %v452_v22, %v451_v19 }
 0x11f   : > { %v456_v24 = vsel %vm455_vm2, %v416_v20, %v453_v23 }
 0x120   : > { %v457_v25 = vadd.f32 %v456_v24, %v454_v21 }
 0x122   : > { %458 = vst [vmem:[%s714_s3] sm:$0x3] %v457_v25 }
 0x123 PF: > { %s14_s12 = sadd.s32 1, %s619_s12  }
 0x124   : > { %p11_p5 = scmp.ge.s32.totalorder %s14_s12, 6  }
 0x126   :  { %13 = sbr.rel (!%p11_p5) target bundleno = 1 (0x1), region = 70 }

// kernel: resblock_forward.3
= control target key start
LH: loop header
LB: loop body
LE: loop exit
PB: predicated region body
PF: predicated region fallthrough
CT: control target
= control target key end

     0   :  { %s692_s15 = smov 0   ;;  %s791_s0 = inlined_call_operand.vmem [shape: f32[512,128], index: 0, kind: input, shape index: {}]   ;;  %s792_s1 = inlined_call_operand.vmem [shape: bf16[512,4], index: 1, kind: input, shape index: {}]   ;;  %s793_s2 = inlined_call_operand.vmem [shape: bf16[4,128], index: 2, kind: input, shape index: {}]   ;;  %s794_s3 = inlined_call_operand.vmem [shape: f32[2,128], index: 3, kind: input, shape index: {}]   ;;  %s795_s4 = inlined_call_operand.vmem [shape: f32[512,128], index: 4, kind: output, shape index: {}]  }
   0x1 LB: > { %s581_s16 = sadd.s32 4294967295, %s665_s15   ;;  %p585_p0 = scmp.ge.s32.totalorder %s665_s15, 1  ;;  %s665_s15 = sphi %s692_s15, %s14_s15  }
   0x2   : > { %p174_p1 = scmp.lt.s32.totalorder %s665_s15, 5 }
   0x4   : > { %p175_p2 = pnand %p585_p0, %p174_p1 }
   0x5   : > { %v314_v0 = vld [vmem:[%s793_s2] sm:$0x3] (!%p175_p2)  ;;  %vm380_vm0 = vcmask (!%p175_p2), 1041408   ;;  %s586_s19 = sshll.u32 (!%p175_p2), %s581_s16, 4  ;;  %vm355_vm1 = vcmask (!%p175_p2), 31744  }
   0x6   : > { %178 = sbr.rel (%p175_p2) target bundleno = 245 (0xf5), region = 36  ;;  %641 = vmatprep.subr.msk.bf16.mxu0 (!%p175_p2), %vm380_vm0, %v314_v0  ;;  %642 = vmatprep.subr.msk.bf16.mxu1 (!%p175_p2), %vm380_vm0, %v314_v0  ;;  %v382_v1 = vsel (!%p175_p2), %vm380_vm0, %v314_v0, 0  ;;  %p206_p3 = scmp.lt.s32.totalorder (!%p175_p2), %s586_s19, 63  ;;  %v592_v11 = vld [vmem:[%s794_s3] ss:$0 sm:$0xff] (!%p175_p2) }
   0x7   : > { %622 = vmatpush3.bf16.msra.mxu0 (!%p175_p2), %v382_v1  ;;  %640 = vmatpush3.bf16.msra.mxu1 (!%p175_p2), %v382_v1  ;;  %v738_v19 = vld [vmem:[%s794_s3 + $0x1] ss:$0 sm:$0xff] (!%p175_p2) }
   0xd   : > { %s797_s19 = smov (!%p206_p3, %s586_s19), 63 }
   0xe   : > { %s589_s20 = sshll.u32 %s797_s19, 2  ;;  %s587_s24 = sshll.u32 %s797_s19, 3 }
   0xf   : > { %s215_s23 = scalar_lea.vmem %s792_s1, %s589_s20  ;;  %s723_s27 = scalar_lea.vmem %s791_s0, %s587_s24 }
  0x10   : > { %v651_v2 = vld [vmem:[%s215_s23] sm:$0xff]   ;;  %v653_v4 = vld [vmem:[%s215_s23 + $0x8] sm:$0xff]   ;;  %v655_v6 = vld [vmem:[%s215_s23 + $0x10] sm:$0xff]   ;;  %s762_s8 = scalar_lea.vmem %s795_s4, %s587_s24 }
  0x11   : > { %v652_v3 = vld [vmem:[%s215_s23 + $0x20] sm:$0xff]   ;;  %623 = vmatprep.mubr.msk.bf16.mxu0 %vm355_vm1, %v651_v2  ;;  %v654_v5 = vld [vmem:[%s215_s23 + $0x28] sm:$0xff]   ;;  %v656_v7 = vld [vmem:[%s215_s23 + $0x30] sm:$0xff]  }
  0x12   : > { %631 = vmatprep.mubr.msk.bf16.mxu1 %vm355_vm1, %v652_v3  ;;  %624 = vmatmul.mubr.msk.bf16.vlgmr.msra.gmra.mrb[0].mxu0 %vm355_vm1, %v653_v4  ;;  %v657_v8 = vld [vmem:[%s215_s23 + $0x18] sm:$0xff]   ;;  %v226_v10 = vld [vmem:[%s723_s27 + $0x10] sm:$0xff]  ;;  %v224_v13 = vld [vmem:[%s723_s27] sm:$0xff] }
  0x13   : > { %632 = vmatmul.mubr.msk.bf16.vlgmr.msra.gmra.mrb[0].mxu1 %vm355_vm1, %v654_v5  ;;  %627 = vmatprep.mubr.msk.bf16.mxu0 %vm355_vm1, %v655_v6  ;;  %v658_v9 = vld [vmem:[%s215_s23 + $0x38] sm:$0xff]   ;;  %v234_v12 = vld [vmem:[%s723_s27 + $0x50] sm:$0xff]  ;;  %v232_v14 = vld [vmem:[%s723_s27 + $0x40] sm:$0xff]  ;;  %v248_v16 = vmul.f32 %v592_v11, %v226_v10  ;;  %v246_v21 = vmul.f32 %v592_v11, %v224_v13 }
  0x14   : > { %635 = vmatprep.mubr.msk.bf16.mxu1 %vm355_vm1, %v656_v7  ;;  %v227_v15 = vld [vmem:[%s723_s27 + $0x18] sm:$0xff]  ;;  %v225_v18 = vld [vmem:[%s723_s27 + $0x8] sm:$0xff]  ;;  %v256_v20 = vmul.f32 %v592_v11, %v234_v12  ;;  %v254_v23 = vmul.f32 %v592_v11, %v232_v14  ;;  %v230_v31 = vld [vmem:[%s723_s27 + $0x30] sm:$0xff] }
  0x15   : > { %v235_v17 = vld [vmem:[%s723_s27 + $0x58] sm:$0xff]  ;;  %v233_v22 = vld [vmem:[%s723_s27 + $0x48] sm:$0xff]  ;;  %v249_v24 = vmul.f32 %v592_v11, %v227_v15  ;;  %v247_v26 = vmul.f32 %v592_v11, %v225_v18  ;;  %v268_v27 = vadd.f32 %v738_v19, %v248_v16  ;;  %v266_v30 = vadd.f32 %v738_v19, %v246_v21  ;;  %v238_v34 = vld [vmem:[%s723_s27 + $0x70] sm:$0xff] }
  0x16   : > { %v257_v25 = vmul.f32 %v592_v11, %v235_v17  ;;  %v255_v28 = vmul.f32 %v592_v11, %v233_v22  ;;  %v276_v29 = vadd.f32 %v738_v19, %v256_v20  ;;  %v274_v32 = vadd.f32 %v738_v19, %v254_v23  ;;  %v228_v35 = vld [vmem:[%s723_s27 + $0x20] sm:$0xff]  ;;  %v231_v39 = vld [vmem:[%s723_s27 + $0x38] sm:$0xff]  ;;  %v229_v44 = vld [vmem:[%s723_s27 + $0x28] sm:$0xff] }
  0x17   : > { %v269_v33 = vadd.f32 %v738_v19, %v249_v24  ;;  %v267_v37 = vadd.f32 %v738_v19, %v247_v26  ;;  %v236_v38 = vld [vmem:[%s723_s27 + $0x60] sm:$0xff]  ;;  %v284_v40 = vmax.f32 %v268_v27, 0.0  ;;  %v252_v42 = vmul.f32 %v592_v11, %v230_v31  ;;  %v239_v43 = vld [vmem:[%s723_s27 + $0x78] sm:$0xff]  ;;  %v237_v49 = vld [vmem:[%s723_s27 + $0x68] sm:$0xff] }
  0x18   : > { %v277_v36 = vadd.f32 %v738_v19, %v257_v25  ;;  %v275_v41 = vadd.f32 %v738_v19, %v255_v28  ;;  %v292_v45 = vmax.f32 %v276_v29, 0.0  ;;  %v282_v46 = vmax.f32 %v266_v30, 0.0 }
  0x19   : > { %v260_v47 = vmul.f32 %v592_v11, %v238_v34  ;;  %v250_v48 = vmul.f32 %v592_v11, %v228_v35  ;;  %v290_v50 = vmax.f32 %v274_v32, 0.0  ;;  %v285_v51 = vmax.f32 %v269_v33, 0.0 }
  0x1a   : > { %628 = vmatmul.mubr.msk.bf16.gmra.mrb[4].mxu0 %vm355_vm1, %v657_v8  ;;  %v258_v52 = vmul.f32 %v592_v11, %v236_v38  ;;  %v253_v53 = vmul.f32 %v592_v11, %v231_v39  ;;  %v293_v55 = vmax.f32 %v277_v36, 0.0  ;;  %v283_v56 = vmax.f32 %v267_v37, 0.0 }
  0x1b   : > { %636 = vmatmul.mubr.msk.bf16.gmra.mrb[4].mxu1 %vm355_vm1, %v658_v9  ;;  %v261_v57 = vmul.f32 %v592_v11, %v239_v43  ;;  %v251_v58 = vmul.f32 %v592_v11, %v229_v44  ;;  %v291_v62 = vmax.f32 %v275_v41, 0.0  ;;  %v272_v63 = vadd.f32 %v738_v19, %v252_v42 }
  0x1c   : > { %v259_v0 = vmul.f32 %v592_v11, %v237_v49  ;;  %v280_v5 = vadd.f32 %v738_v19, %v260_v47  ;;  %v270_v6 = vadd.f32 %v738_v19, %v250_v48  ;;  %v278_v12 = vadd.f32 %v738_v19, %v258_v52 }
  0x1d   : > { %v273_v11 = vadd.f32 %v738_v19, %v253_v53  ;;  %v281_v16 = vadd.f32 %v738_v19, %v261_v57  ;;  %v271_v17 = vadd.f32 %v738_v19, %v251_v58  ;;  %v288_v20 = vmax.f32 %v272_v63, 0.0 }
  0x1e   : > { %v279_v21 = vadd.f32 %v738_v19, %v259_v0  ;;  %v296_v22 = vmax.f32 %v280_v5, 0.0  ;;  %v286_v23 = vmax.f32 %v270_v6, 0.0  ;;  %v294_v24 = vmax.f32 %v278_v12, 0.0 }
  0x1f   : > { %v289_v25 = vmax.f32 %v273_v11, 0.0  ;;  %v297_v27 = vmax.f32 %v281_v16, 0.0  ;;  %v287_v28 = vmax.f32 %v271_v17, 0.0 }
  0x20   : > { %v295_v32 = vmax.f32 %v279_v21, 0.0 }
  0xe5   : > { %v625_v54 = vpop.f32.mrb[0].mxu0 }
  0xe6   : > { %v483_v59 = vadd.f32 %v625_v54, %v284_v40  ;;  %v633_v60 = vpop.f32.mrb[0].mxu1  ;;  %v418_v61 = vpop.f32.mrb[1].mxu0 }
  0xe7   : > { %v491_v1 = vadd.f32 %v633_v60, %v292_v45  ;;  %v481_v2 = vadd.f32 %v418_v61, %v282_v46  ;;  %v450_v3 = vpop.f32.mrb[1].mxu1  ;;  %v626_v4 = vpop.f32.mrb[2].mxu0 }
  0xe8   : > { %499 = vst [vmem:[%s762_s8 + $0x10] sm:$0xff] %v483_v59  ;;  %v489_v7 = vadd.f32 %v450_v3, %v290_v50  ;;  %v484_v8 = vadd.f32 %v626_v4, %v285_v51  ;;  %v634_v9 = vpop.f32.mrb[2].mxu1  ;;  %v421_v10 = vpop.f32.mrb[3].mxu0 }
  0xe9   : > { %507 = vst [vmem:[%s762_s8 + $0x50] sm:$0xff] %v491_v1  ;;  %497 = vst [vmem:[%s762_s8] sm:$0xff] %v481_v2  ;;  %v492_v13 = vadd.f32 %v634_v9, %v293_v55  ;;  %v482_v14 = vadd.f32 %v421_v10, %v283_v56  ;;  %v453_v15 = vpop.f32.mrb[3].mxu1 }
  0xea   : > { %505 = vst [vmem:[%s762_s8 + $0x40] sm:$0xff] %v489_v7  ;;  %500 = vst [vmem:[%s762_s8 + $0x18] sm:$0xff] %v484_v8  ;;  %v490_v18 = vadd.f32 %v453_v15, %v291_v62 }
  0xeb   : > { %508 = vst [vmem:[%s762_s8 + $0x58] sm:$0xff] %v492_v13  ;;  %498 = vst [vmem:[%s762_s8 + $0x8] sm:$0xff] %v482_v14 }
  0xec   : > { %506 = vst [vmem:[%s762_s8 + $0x48] sm:$0xff] %v490_v18 }
  0xed   : > { %v629_v26 = vpop.f32.mrb[4].mxu0 }
  0xee   : > { %v487_v29 = vadd.f32 %v629_v26, %v288_v20  ;;  %v637_v30 = vpop.f32.mrb[4].mxu1  ;;  %v434_v31 = vpop.f32.mrb[5].mxu0 }
  0xef   : > { %v495_v19 = vadd.f32 %v637_v30, %v296_v22  ;;  %v485_v33 = vadd.f32 %v434_v31, %v286_v23  ;;  %v466_v34 = vpop.f32.mrb[5].mxu1  ;;  %v630_v35 = vpop.f32.mrb[6].mxu0 }
  0xf0   : > { %503 = vst [vmem:[%s762_s8 + $0x30] sm:$0xff] %v487_v29  ;;  %v493_v36 = vadd.f32 %v466_v34, %v294_v24  ;;  %v488_v37 = vadd.f32 %v630_v35, %v289_v25  ;;  %v638_v38 = vpop.f32.mrb[6].mxu1  ;;  %v437_v39 = vpop.f32.mrb[7].mxu0 }
  0xf1   : > { %511 = vst [vmem:[%s762_s8 + $0x70] sm:$0xff] %v495_v19  ;;  %501 = vst [vmem:[%s762_s8 + $0x20] sm:$0xff] %v485_v33  ;;  %v496_v40 = vadd.f32 %v638_v38, %v297_v27  ;;  %v486_v41 = vadd.f32 %v437_v39, %v287_v28  ;;  %v469_v42 = vpop.f32.mrb[7].mxu1 }
  0xf2   : > { %509 = vst [vmem:[%s762_s8 + $0x60] sm:$0xff] %v493_v36  ;;  %504 = vst [vmem:[%s762_s8 + $0x38] sm:$0xff] %v488_v37  ;;  %v494_v43 = vadd.f32 %v469_v42, %v295_v32 }
  0xf3   : > { %512 = vst [vmem:[%s762_s8 + $0x78] sm:$0xff] %v496_v40  ;;  %502 = vst [vmem:[%s762_s8 + $0x28] sm:$0xff] %v486_v41 }
  0xf4   : > { %510 = vst [vmem:[%s762_s8 + $0x68] sm:$0xff] %v494_v43 }
  0xf5 PF: > { %s14_s15 = sadd.s32 1, %s665_s15  }
  0xf6   : > { %p11_p4 = scmp.ge.s32.totalorder %s14_s15, 6  }
  0xf8   :  { %13 = sbr.rel (!%p11_p4) target bundleno = 1 (0x1), region = 69 }

</bundles_post_ra>
